<compile_context>
chip_gen: v7x
topology: tpu7x:2x2x1
jax: 0.10.0
libtpu: 0.0.40
codegen_flags: <defaults>
</compile_context>

<pallas_src>
import functools

import jax
import jax.numpy as jnp
from jax.experimental import pallas as pl
from jax.experimental.pallas import tpu as pltpu

_KSIZE = 7
_PAD = _KSIZE // 2


# --------------------------------------------------------------------------
# Kernel 1: streaming channel mean/max pooling on the flattened [B, C, H*W].
# --------------------------------------------------------------------------
def _pool_kernel(x_ref, o_ref, sum_ref, max_ref, *, channels, c_tile):
    # x_ref  : VMEM [1, c_tile, hw_tile]  current channel tile
    # o_ref  : VMEM [1, 2, hw_tile]       (avg, max) planes (written at k==last)
    # sum_ref: VMEM [1, hw_tile] f32      running channel sum
    # max_ref: VMEM [1, hw_tile] f32      running channel max
    k = pl.program_id(2)
    n_k = pl.num_programs(2)

    @pl.when(k == 0)
    def _init():
        sum_ref[...] = jnp.zeros(sum_ref.shape, jnp.float32)
        max_ref[...] = jnp.full(max_ref.shape, -jnp.inf, jnp.float32)

    x = x_ref[0]                                         # (c_tile, hw_tile)

    def _accum(x_sum, x_max):
        sum_ref[...] += jnp.sum(x_sum, axis=0, keepdims=True, dtype=jnp.float32)
        max_ref[...] = jnp.maximum(
            max_ref[...],
            jnp.max(x_max, axis=0, keepdims=True).astype(jnp.float32))

    if channels % c_tile != 0:
        # cdiv grid: the final channel block is partial -> mask its tail
        # (padded rows contribute 0 to the sum and -inf to the max).  Only the
        # last k step pays for the mask; all other steps stay pure vld+vadd/vmax.
        @pl.when(k < n_k - 1)
        def _full():
            _accum(x, x)

        @pl.when(k == n_k - 1)
        def _tail():
            rem = channels - k * c_tile
            ch = jax.lax.broadcasted_iota(jnp.int32, x.shape, 0)
            valid = ch < rem
            _accum(jnp.where(valid, x, 0.0), jnp.where(valid, x, -jnp.inf))
    else:
        _accum(x, x)

    @pl.when(k == n_k - 1)
    def _finalize():
        inv_c = jnp.float32(1.0 / channels)
        o_ref[0, :1, :] = sum_ref[...] * inv_c
        o_ref[0, 1:2, :] = max_ref[...]


# --------------------------------------------------------------------------
# Kernel 2: 7x7 conv over the (avg, max) planes + sigmoid, one step per batch.
# --------------------------------------------------------------------------
def _conv_sigmoid_kernel(w_ref, p_ref, o_ref, pad_ref, *, height, width):
    # w_ref  : SMEM [2*7*7]            conv weight, (c, ky, kx) row-major
    # p_ref  : VMEM [1, 2, H, W] f32   pooled (avg, max) planes for batch b
    # o_ref  : VMEM [1, H, W]          sigmoid attention map for batch b
    # pad_ref: VMEM [2, H+6, W+6] f32  zero-padded planes for the conv
    hp, wp = height + 2 * _PAD, width + 2 * _PAD

    # Zero only the 3-wide borders (the center is fully overwritten below).
    pad_ref[:, :_PAD, :] = jnp.zeros((2, _PAD, wp), jnp.float32)
    pad_ref[:, height + _PAD:, :] = jnp.zeros((2, _PAD, wp), jnp.float32)
    pad_ref[:, :, :_PAD] = jnp.zeros((2, hp, _PAD), jnp.float32)
    pad_ref[:, :, width + _PAD:] = jnp.zeros((2, hp, _PAD), jnp.float32)
    pad_ref[:, _PAD:_PAD + height, _PAD:_PAD + width] = p_ref[0].astype(jnp.float32)

    acc = jnp.zeros((height, width), jnp.float32)
    for c in range(2):
        for kx in range(_KSIZE):
            # Hoist the kx lane shift: one shifted load reused across all ky.
            col = pad_ref[c, :, kx:kx + width]            # (H+6, W)
            for ky in range(_KSIZE):
                wv = w_ref[c * _KSIZE * _KSIZE + ky * _KSIZE + kx]
                acc = acc + wv * col[ky:ky + height, :]
    o_ref[0] = jax.nn.sigmoid(acc).astype(o_ref.dtype)


# --------------------------------------------------------------------------
# Wrapper
# --------------------------------------------------------------------------
def _vmem_config():
    """(scoped vmem_limit_bytes, per-input-tile budget bytes) per generation."""
    cap = None
    try:
        info = pltpu.get_tpu_info()
        cap = getattr(info, "vmem_capacity_bytes", None)
    except Exception:
        cap = None
    if cap is not None and cap >= 128 * 1024 * 1024:
        # v5e / v6e: 128 MiB physical VMEM -> big tiles, 2x double-buffered.
        return 96 * 1024 * 1024, 32 * 1024 * 1024
    # v7x (64 MiB per TensorCore) or unknown: stay conservative.
    return 48 * 1024 * 1024, 16 * 1024 * 1024


def spatial_attention(x, w, *, c_tile=None, hw_tile=None):
    """x: [B, C, H, W] (NCHW); w: [1, 2, 7, 7] Conv2d weight (bias=False).
    Returns the sigmoid spatial attention map of shape [B, 1, H, W]."""
    B, C, H, W = x.shape
    assert w.shape == (1, 2, _KSIZE, _KSIZE)
    HW = H * W
    itemsize = x.dtype.itemsize

    vmem_limit, tile_budget = _vmem_config()

    # Spatial (lane) tiling: split H*W only when it buys megacore parallelism
    # at B == 1, or when a single channel row would blow the tile budget.
    if hw_tile is None:
        hw_tile = HW
        if B == 1 and HW >= 256:
            hw_tile = ((HW // 2 + 127) // 128) * 128
        max_hw = max(128, (tile_budget // itemsize // 128) * 128)
        hw_tile = min(hw_tile, max_hw)
    hw_tile = max(1, min(hw_tile, HW))
    n_hw = pl.cdiv(HW, hw_tile)

    # Channel tiling: largest 8-aligned tile that fits the budget; the cdiv
    # grid + in-kernel tail mask means C's factorization never shrinks it.
    if c_tile is None:
        row_bytes = hw_tile * itemsize
        max_ct = max(1, tile_budget // row_bytes)
        if max_ct >= C:
            c_tile = C
        else:
            c_tile = (max_ct // 8) * 8
            if c_tile == 0:
                c_tile = max_ct
    c_tile = max(1, min(c_tile, C))
    n_k = pl.cdiv(C, c_tile)

    x_flat = x.reshape(B, C, HW)                         # free, contiguous
    w_flat = w.reshape(2 * _KSIZE * _KSIZE).astype(jnp.float32)

    # ---- Kernel 1: channel pooling (HBM-bandwidth bound) --------------------
    pool = pl.pallas_call(
        functools.partial(_pool_kernel, channels=C, c_tile=c_tile),
        out_shape=jax.ShapeDtypeStruct((B, 2, HW), jnp.float32),
        grid=(B, n_hw, n_k),
        in_specs=[
            pl.BlockSpec((1, c_tile, hw_tile), lambda b, h, k: (b, k, h)),
        ],
        out_specs=pl.BlockSpec((1, 2, hw_tile), lambda b, h, k: (b, 0, h)),
        scratch_shapes=[
            pltpu.VMEM((1, hw_tile), jnp.float32),       # running sum
            pltpu.VMEM((1, hw_tile), jnp.float32),       # running max
        ],
        compiler_params=pltpu.CompilerParams(
            dimension_semantics=("parallel", "parallel", "arbitrary"),
            vmem_limit_bytes=vmem_limit,
        ),
    )(x_flat)

    planes = pool.reshape(B, 2, H, W)                    # tiny array, free-ish

    # ---- Kernel 2: 7x7 conv + sigmoid (negligible data) ---------------------
    y = pl.pallas_call(
        functools.partial(_conv_sigmoid_kernel, height=H, width=W),
        out_shape=jax.ShapeDtypeStruct((B, H, W), x.dtype),
        grid=(B,),
        in_specs=[
            pl.BlockSpec(memory_space=pltpu.MemorySpace.SMEM),   # 98 weights
            pl.BlockSpec((1, 2, H, W), lambda b: (b, 0, 0, 0)),
        ],
        out_specs=pl.BlockSpec((1, H, W), lambda b: (b, 0, 0)),
        scratch_shapes=[
            pltpu.VMEM((2, H + 2 * _PAD, W + 2 * _PAD), jnp.float32),
        ],
        compiler_params=pltpu.CompilerParams(
            dimension_semantics=("parallel",),
        ),
    )(w_flat, planes)

    return y.reshape(B, 1, H, W)


def _reference(x, w):
    """Pure-JAX reference of the PyTorch forward."""
    avg = jnp.mean(x, axis=1, keepdims=True)
    mx = jnp.max(x, axis=1, keepdims=True)
    s = jnp.concatenate([avg, mx], axis=1)               # [B, 2, H, W]
    y = jax.lax.conv_general_dilated(
        s, w, window_strides=(1, 1),
        padding=((_PAD, _PAD), (_PAD, _PAD)),
        dimension_numbers=("NCHW", "OIHW", "NCHW"))
    return jax.nn.sigmoid(y)


if __name__ == "__main__":
    key = jax.random.PRNGKey(0)
    k_x, k_w, k_x2 = jax.random.split(key, 3)

    # Deterministic synthetic Conv2d(2, 1, 7, padding=3, bias=False) weight.
    w = jax.random.normal(k_w, (1, 2, _KSIZE, _KSIZE), dtype=jnp.float32) * 0.1

    # Case 1: small feature map, single channel tile, batch-parallel grid.
    B, C, H, W = 2, 32, 16, 16
    x = jax.random.normal(k_x, (B, C, H, W), dtype=jnp.float32)
    out = jax.block_until_ready(spatial_attention(x, w))
    ref = _reference(x, w)
    assert out.shape == (B, 1, H, W)
    assert jnp.allclose(out, ref, atol=1e-5, rtol=1e-5), \
        float(jnp.max(jnp.abs(out - ref)))

    # Case 2: B=1 (exercises the spatial megacore split) with C=20 and a forced
    # c_tile=8 (exercises multi-step accumulation + ragged-tail channel mask).
    B2, C2 = 1, 20
    x2 = jax.random.normal(k_x2, (B2, C2, H, W), dtype=jnp.float32)
    out2 = jax.block_until_ready(spatial_attention(x2, w, c_tile=8))
    ref2 = _reference(x2, w)
    assert out2.shape == (B2, 1, H, W)
    assert jnp.allclose(out2, ref2, atol=1e-5, rtol=1e-5), \
        float(jnp.max(jnp.abs(out2 - ref2)))

    print("KERNEL_OK")
</pallas_src>

<mosaic_0001>
module attributes {stable_mosaic.version = 11 : i64} {
  func.func @_pool_kernel(%arg0: i32, %arg1: i32, %arg2: i32, %arg3: memref<1x32x256xf32, #tpu.memory_space<vmem>>, %arg4: memref<1x2x256xf32, #tpu.memory_space<vmem>>, %arg5: memref<1x256xf32, #tpu.memory_space<vmem>>, %arg6: memref<1x256xf32, #tpu.memory_space<vmem>>) attributes {dimension_semantics = [#tpu.dimension_semantics<parallel>, #tpu.dimension_semantics<parallel>, #tpu.dimension_semantics<arbitrary>], iteration_bounds = array<i64: 2, 1, 1>, scalar_prefetch = 0 : i64, scratch_operands = 2 : i64, tpu.core_type = #tpu.core_type<tc>, window_params = [{transform_indices = @transform_0, window_bounds = array<i64: 1, 32, 256>}, {transform_indices = @transform_1, window_bounds = array<i64: 1, 2, 256>}]} {
    %c0_i32 = arith.constant 0 : i32
    %0 = arith.cmpi eq, %arg2, %c0_i32 : i32
    %1 = arith.extui %0 : i1 to i32
    %c0_i32_0 = arith.constant 0 : i32
    %2 = arith.cmpi ne, %1, %c0_i32_0 : i32
    scf.if %2 {
      %cst_14 = arith.constant 0.000000e+00 : f32
      %18 = vector.broadcast %cst_14 : f32 to vector<1x256xf32>
      %c0_15 = arith.constant 0 : index
      %c0_16 = arith.constant 0 : index
      %19 = vector.load %arg5[%c0_15, %c0_16] : memref<1x256xf32, #tpu.memory_space<vmem>>, vector<1x256xf32>
      tpu.vector_store %arg5[%c0_15, %c0_16], %18 {strides = array<i32>} : memref<1x256xf32, #tpu.memory_space<vmem>>, vector<1x256xf32>,
      %cst_17 = arith.constant 0xFF800000 : f32
      %20 = vector.broadcast %cst_17 : f32 to vector<1x256xf32>
      %c0_18 = arith.constant 0 : index
      %c0_19 = arith.constant 0 : index
      %21 = vector.load %arg6[%c0_18, %c0_19] : memref<1x256xf32, #tpu.memory_space<vmem>>, vector<1x256xf32>
      tpu.vector_store %arg6[%c0_18, %c0_19], %20 {strides = array<i32>} : memref<1x256xf32, #tpu.memory_space<vmem>>, vector<1x256xf32>,
    } else {
    }
    %c0 = arith.constant 0 : index
    %c0_1 = arith.constant 0 : index
    %c0_2 = arith.constant 0 : index
    %3 = vector.load %arg3[%c0, %c0_1, %c0_2] : memref<1x32x256xf32, #tpu.memory_space<vmem>>, vector<1x32x256xf32>
    %4 = vector.shape_cast %3 : vector<1x32x256xf32> to vector<32x256xf32>
    %c0_3 = arith.constant 0 : index
    %c0_4 = arith.constant 0 : index
    %5 = vector.load %arg5[%c0_3, %c0_4] : memref<1x256xf32, #tpu.memory_space<vmem>>, vector<1x256xf32>
    %cst = arith.constant dense<0.000000e+00> : vector<256xf32>
    %6 = vector.multi_reduction <add>, %4, %cst [0] : vector<32x256xf32> to vector<256xf32>
    %7 = vector.shape_cast %6 : vector<256xf32> to vector<1x256xf32>
    %8 = arith.addf %5, %7 : vector<1x256xf32>
    %c0_5 = arith.constant 0 : index
    %c0_6 = arith.constant 0 : index
    %9 = vector.load %arg5[%c0_5, %c0_6] : memref<1x256xf32, #tpu.memory_space<vmem>>, vector<1x256xf32>
    tpu.vector_store %arg5[%c0_5, %c0_6], %8 {strides = array<i32>} : memref<1x256xf32, #tpu.memory_space<vmem>>, vector<1x256xf32>,
    %c0_7 = arith.constant 0 : index
    %c0_8 = arith.constant 0 : index
    %10 = vector.load %arg6[%c0_7, %c0_8] : memref<1x256xf32, #tpu.memory_space<vmem>>, vector<1x256xf32>
    %cst_9 = arith.constant dense<0xFF800000> : vector<256xf32>
    %11 = vector.multi_reduction <maximumf>, %4, %cst_9 [0] : vector<32x256xf32> to vector<256xf32>
    %12 = vector.shape_cast %11 : vector<256xf32> to vector<1x256xf32>
    %13 = arith.maximumf %10, %12 : vector<1x256xf32>
    %c0_10 = arith.constant 0 : index
    %c0_11 = arith.constant 0 : index
    %14 = vector.load %arg6[%c0_10, %c0_11] : memref<1x256xf32, #tpu.memory_space<vmem>>, vector<1x256xf32>
    tpu.vector_store %arg6[%c0_10, %c0_11], %13 {strides = array<i32>} : memref<1x256xf32, #tpu.memory_space<vmem>>, vector<1x256xf32>,
    %c0_i32_12 = arith.constant 0 : i32
    %15 = arith.cmpi eq, %arg2, %c0_i32_12 : i32
    %16 = arith.extui %15 : i1 to i32
    %c0_i32_13 = arith.constant 0 : i32
    %17 = arith.cmpi ne, %16, %c0_i32_13 : i32
    scf.if %17 {
      %c0_14 = arith.constant 0 : index
      %c0_15 = arith.constant 0 : index
      %18 = vector.load %arg5[%c0_14, %c0_15] : memref<1x256xf32, #tpu.memory_space<vmem>>, vector<1x256xf32>
      %cst_16 = arith.constant 3.125000e-02 : f32
      %19 = vector.broadcast %cst_16 : f32 to vector<1x256xf32>
      %20 = arith.mulf %18, %19 : vector<1x256xf32>
      %c0_17 = arith.constant 0 : index
      %c0_18 = arith.constant 0 : index
      %c0_19 = arith.constant 0 : index
      %21 = vector.load %arg4[%c0_17, %c0_18, %c0_19] : memref<1x2x256xf32, #tpu.memory_space<vmem>>, vector<1x1x256xf32>
      %22 = vector.shape_cast %21 : vector<1x1x256xf32> to vector<1x256xf32>
      %23 = vector.shape_cast %20 : vector<1x256xf32> to vector<1x1x256xf32>
      tpu.vector_store %arg4[%c0_17, %c0_18, %c0_19], %23 {strides = array<i32>} : memref<1x2x256xf32, #tpu.memory_space<vmem>>, vector<1x1x256xf32>,
      %c0_20 = arith.constant 0 : index
      %c0_21 = arith.constant 0 : index
      %24 = vector.load %arg6[%c0_20, %c0_21] : memref<1x256xf32, #tpu.memory_space<vmem>>, vector<1x256xf32>
      %c0_22 = arith.constant 0 : index
      %c1 = arith.constant 1 : index
      %c0_23 = arith.constant 0 : index
      %25 = vector.load %arg4[%c0_22, %c1, %c0_23] : memref<1x2x256xf32, #tpu.memory_space<vmem>>, vector<1x1x256xf32>
      %26 = vector.shape_cast %25 : vector<1x1x256xf32> to vector<1x256xf32>
      %27 = vector.shape_cast %24 : vector<1x256xf32> to vector<1x1x256xf32>
      tpu.vector_store %arg4[%c0_22, %c1, %c0_23], %27 {strides = array<i32>} : memref<1x2x256xf32, #tpu.memory_space<vmem>>, vector<1x1x256xf32>,
    } else {
    }
    return
  }
  func.func @transform_0(%arg0: i32, %arg1: i32, %arg2: i32) -> (i32, i32, i32) {
    %c0_i32 = arith.constant 0 : i32
    return %arg0, %arg2, %arg1 : i32, i32, i32
  }
  func.func @transform_1(%arg0: i32, %arg1: i32, %arg2: i32) -> (i32, i32, i32) {
    %c0_i32 = arith.constant 0 : i32
    %c0_i32_0 = arith.constant 0 : i32
    return %arg0, %c0_i32, %arg1 : i32, i32, i32
  }
}

</mosaic_0001>

<bundles_post_ra>
// kernel: tpu_custom_call.1
= control target key start
LH: loop header
LB: loop body
LE: loop exit
PB: predicated region body
PF: predicated region fallthrough
CT: control target
= control target key end

     0   :  { %6 = vsyncpa [#allocation5], 0  ;;  %s789_s0 = inlined_call_operand.hbm [shape: f32[2,32,256], index: 0, kind: input, shape index: {}]   ;;  %s790_s1 = inlined_call_operand.hbm [shape: f32[2,2,256], index: 1, kind: output, shape index: {}]  }
   0x1   :  { %8 = vsyncpa [#allocation5 + $0x1], 0 }
   0x2   :  { %9 = vsyncpa [#allocation6], 0 }
   0x3   :  { %11 = vsyncpa [#allocation6 + $0x1], 0  ;;  %s599_s6 = smov 0   ;;  %s601_s7 = smov 0  }
   0x4   :  { %s603_s8 = smov 0   ;;  %s605_s9 = smov 0  }
   0x5   :  { %s607_s10 = smov 0   ;;  %s609_s11 = smov 0  }
   0x6 LB: > { %s383_s12 = sadd.s32 4294967295, %s580_s11   ;;  %s384_s13 = sadd.s32 4294967294, %s580_s11   ;;  %s580_s11 = sphi %s609_s11, %s17_s11   ;;  %s576_s10 = sphi %s607_s10, %s807_s10   ;;  %s572_s9 = sphi %s605_s9, %s806_s9   ;;  %s568_s8 = sphi %s603_s8, %s805_s8   ;;  %s564_s7 = sphi %s601_s7, %s804_s7   ;;  %s560_s6 = sphi %s599_s6, %s803_s6  }
   0x7   : > { %s36_s14 = sadd.s32 1, %s576_s10  ;;  %s47_s15 = sadd.s32 1, %s568_s8 }
   0x8   : > { %p38_p0 = scmp.ge.s32.totalorder %s36_s14, 2  ;;  %p54_p1 = scmp.ne.s32.totalorder %s568_s8, %s564_s7 }
   0x9   : > { %p55_p2 = scmp.eq.s32.totalorder %s580_s11, 0  ;;  %p60_p3 = scmp.ne.s32.totalorder %s564_s7, %s560_s6 }
   0xa   : > { %s809_s14 = smov (%p38_p0, %s36_s14), 0  ;;  %p61_p5 = scmp.eq.s32.totalorder %s383_s12, 0 }
   0xb   : > { %p640_p4 = por %p55_p2, %p54_p1  ;;  %s40_s17 = ssub.s32 %s576_s10, %s809_s14 }
   0xc   : > { %p86_p6 = scmp.eq.s32.totalorder %s383_s12, 1  ;;  %p45_p7 = scmp.eq.s32.totalorder %s40_s17, 0 }
   0xd   : > { %p646_p8 = por %p61_p5, %p60_p3  ;;  %p92_p10 = scmp.eq.s32.totalorder %s384_s13, 1 }
   0xe   : > { %p650_p9 = por %p86_p6, %p54_p1  ;;  %p413_p13 = scmp.lt.s32.totalorder %s580_s11, 2 }
   0xf   : > { %s655_s20 = scalar_select %p45_p7, %s568_s8, %s47_s15  }
  0x10   : > { %s794_s19 = scalar_select %p650_p9, 1, 0 }
  0x11   : > { %p657_p11 = por %p92_p10, %p60_p3  ;;  %s112_s22 = sand.u32 1, %s568_s8  }
  0x12   : > { %s387_s23 = sshll.u32 %s112_s22, 6  ;;  %s399_s24 = sshll.u32 %s576_s10, 10 }
  0x13   : > { %s795_s21 = scalar_select %p657_p11, 1, 0 }
  0x14   : > { %s668_s27 = scalar_lea.hbm %s789_s0, %s399_s24  ;;  %s116_s28 = scalar_lea.vmem [#allocation4], %s387_s23 }
  0x15   : > { %s128_s29 = sshll.u32 %s116_s28, 4  ;;  %p674_p0 = pnand %p413_p13, %p640_p4  ;;  %s670_s29 = int_to_ptr.vmem [resolvable:$true] %s128_s29 }
  0x16   : > { %s679_s2 = scalar_lea.sflag [#allocation5], %s112_s22  ;;  %s468_s3 = scalar_lea.hbm %s668_s27, 1024 }
  0x17   : > { %p469_p2 = scmp.ne.s32.totalorder %s668_s27, %s468_s3  ;;  %p470_p3 = pneg %p674_p0 }
  0x18   : > { %s473_s12 = scalar_lea.hbm %s789_s0, 2048  ;;  %p474_p4 = scmp.lt.u32.totalorder %s668_s27, %s789_s0 }
  0x19   : > { %p471_p5 = pnand %p470_p3, %p469_p2  ;;  %p475_p7 = scmp.lt.u32.totalorder %s473_s12, %s468_s3 }
  0x1a   : > { %p477_p13 = scmp.lt.u32.totalorder %s468_s3, %s668_s27 }
  0x1b   : > { %p472_p6 = pneg %p471_p5  ;;  %p476_p10 = por %p475_p7, %p474_p4 }
  0x1d   : > { %p478_p12 = por %p477_p13, %p476_p10 }
  0x1f   : > { %p479_p1 = pnand %p478_p12, %p472_p6 }
  0x21   : > { %482 = shalt.err (!%p479_p1)
}
  0x22   : > { %s483_s16 = scalar_lea.vmem %s670_s29, 1024  ;;  %s582_s17 = smov [#allocation4]  }
  0x23   : > { %p484_p2 = scmp.ne.s32.totalorder %s670_s29, %s483_s16  ;;  %s488_s22 = sshll.u32 %s582_s17, 4  ;;  %s489_s22 = int_to_ptr.vmem [resolvable:$false] %s488_s22 }
  0x24   : > { %s490_s23 = scalar_lea.vmem %s489_s22, 2048  ;;  %p491_p9 = scmp.lt.s32.totalorder %s670_s29, %s489_s22 }
  0x25   : > { %p486_p5 = pnand %p484_p2, %p470_p3  ;;  %p492_p4 = scmp.lt.s32.totalorder %s490_s23, %s483_s16 }
  0x27   : > { %p487_p11 = pneg %p486_p5  ;;  %p493_p7 = por %p492_p4, %p491_p9 }
  0x29   : > { %p494_p10 = pnand %p493_p7, %p487_p11 }
  0x2b   : > { %497 = shalt.err (!%p494_p10)
}
  0x2c   : > { %s583_s24 = smov 256   ;;  %s584_s25 = smov 16  }
  0x2d   : > { %408 = dma.hbm_to_vmem [thread:$0]  (!%p674_p0), %s668_s27, 1024, %s670_s29, %s679_s2, %s583_s24, %s583_s24, %s584_s25  }
  0x2e   : > { %p136_p12 = scmp.lt.s32.totalorder %s580_s11, 3  ;;  %p797_p1 = scmp.ge.s32.totalorder %s580_s11, 1 }
  0x30   : > { %p137_p3 = pnand %p797_p1, %p136_p12 }
  0x31   : > { %s711_s26 = sand.u32 (!%p137_p3), 1, %s564_s7  }
  0x32   : > { %140 = sbr.rel (%p137_p3) target bundleno = 110 (0x6e), region = 24  ;;  %s391_s28 = sshll.u32 (!%p137_p3), %s711_s26, 6 }
  0x33   : > { %s143_s3 = scalar_lea.sflag (!%p137_p3), [#allocation5], %s711_s26  ;;  %s146_s4 = scalar_lea.vmem (!%p137_p3), [#allocation4], %s391_s28 }
  0x39   : > { %551 = dma.done.wait (%p646_p8), %s143_s3, 1024  }
  0x3a   : > { %553 = vsyncadd (%p646_p8), %s143_s3, 4294966272  ;;  %v172_v0 = vlaneseq  ;;  %v585_v2 = vmov 0.0   ;;  %v586_v3 = vmov -inf   ;;  %v178_v4 = vld [vmem:[%s146_s4] sm:$0xff]  ;;  %v179_v5 = vld [vmem:[%s146_s4 + $0x8] sm:$0xff]  ;;  %s392_s18 = sshll.u32 %s711_s26, 2 }
  0x3b   : > { %v180_v6 = vld [vmem:[%s146_s4 + $0x10] sm:$0xff]  ;;  %v181_v7 = vld [vmem:[%s146_s4 + $0x18] sm:$0xff]  ;;  %v182_v8 = vld [vmem:[%s146_s4 + $0x20] sm:$0xff]  ;;  %v587_v31 = vmov 1966171168   ;;  %s164_s27 = scalar_lea.vmem [#allocation7], %s392_s18 }
  0x3c   : > { %vm719_vm0 = vcmp.lt.s32.totalorder %v172_v0, 256  ;;  %v183_v9 = vld [vmem:[%s146_s4 + $0x28] sm:$0xff]  ;;  %v187_v10 = vadd.f32 %v180_v6, %v178_v4  ;;  %v184_v11 = vld [vmem:[%s146_s4 + $0x30] sm:$0xff]  ;;  %v185_v12 = vld [vmem:[%s146_s4 + $0x38] sm:$0xff]  ;;  %v196_v13 = vadd.f32 %v181_v7, %v179_v5  ;;  %v230_v14 = vmax.f32 %v178_v4, %v182_v8  ;;  %s294_s29 = sshll.u32 %s164_s27, 4  ;;  %s400_s30 = sshll.u32 %s572_s9, 6  ;;  %s735_s29 = int_to_ptr.vmem [resolvable:$true] %s294_s29 }
  0x3d   : > { %176 = vst.msk [vmem:[#allocation2] sm:$0x3] %vm719_vm0, %v585_v2  ;;  %177 = vst.msk [vmem:[#allocation3] sm:$0x3] %vm719_vm0, %v586_v3  ;;  %v239_v15 = vmax.f32 %v179_v5, %v183_v9  ;;  %v231_v17 = vmax.f32 %v180_v6, %v184_v11  ;;  %v240_v18 = vmax.f32 %v181_v7, %v185_v12  ;;  %v209_v32 = vunpack.c.l.s4 %v587_v31  ;;  %s740_s12 = scalar_lea.hbm %s790_s1, %s400_s30  ;;  %s278_s9 = scalar_lea.sflag [#allocation6], %s711_s26 }
  0x3e   : > { %v188_v16 = vadd.f32 %v187_v10, %v182_v8  ;;  %v197_v19 = vadd.f32 %v196_v13, %v183_v9  ;;  %v212_v42 = vshrl.u32 %v172_v0, 7  ;;  %s498_s13 = scalar_lea.vmem %s735_s29, 64  ;;  %p800_p9 = scmp.ne.s32.totalorder %s794_s19, 0 }
  0x3f   : > { %v232_v21 = vmax.f32 %v230_v14, %v231_v17  ;;  %v241_v22 = vmax.f32 %v239_v15, %v240_v18  ;;  %v210_v41 = vunpack.c.0.s8 %v209_v32  ;;  %p499_p8 = scmp.ne.s32.totalorder %s735_s29, %s498_s13  ;;  %s588_s15 = smov [#allocation7]  }
  0x40   : > { %v189_v20 = vadd.f32 %v188_v16, %v184_v11  ;;  %v198_v23 = vadd.f32 %v197_v19, %v185_v12  ;;  %s502_s16 = sshll.u32 %s588_s15, 4  ;;  %s503_s16 = int_to_ptr.vmem [resolvable:$false] %s502_s16 }
  0x41   : > { %v233_v25 = vrot.slane %v232_v21, 4  ;;  %v242_v26 = vrot.slane %v241_v22, 4  ;;  %v213_v51 = vsub.s32 %v210_v41, %v212_v42  ;;  %p500_p11 = pnand %p499_p8, %p800_p9  ;;  %s504_s17 = scalar_lea.vmem %s503_s16, 128 }
  0x42   : > { %v190_v24 = vrot.slane %v189_v20, 4  ;;  %v199_v27 = vrot.slane %v198_v23, 4  ;;  %p505_p6 = scmp.lt.s32.totalorder %s735_s29, %s503_s16  ;;  %p506_p13 = scmp.lt.s32.totalorder %s504_s17, %s498_s13 }
  0x43   : > { %v234_v29 = vmax.f32 %v232_v21, %v233_v25  ;;  %v243_v30 = vmax.f32 %v241_v22, %v242_v26  ;;  %p501_p0 = pneg %p500_p11 }
  0x44   : > { %v191_v28 = vadd.f32 %v190_v24, %v189_v20  ;;  %v200_v33 = vadd.f32 %v199_v27, %v198_v23  ;;  %v229_v57 = vld [vmem:[#allocation3] sm:$0x3]  ;;  %v186_v58 = vld [vmem:[#allocation2] sm:$0x3]  ;;  %p507_p2 = por %p506_p13, %p505_p6 }
  0x45   : > { %v235_v35 = vrot.slane %v234_v29, 2  ;;  %v244_v36 = vrot.slane %v243_v30, 2 }
  0x46   : > { %v192_v34 = vrot.slane %v191_v28, 2  ;;  %v201_v37 = vrot.slane %v200_v33, 2  ;;  %p508_p5 = pnand %p507_p2, %p501_p0 }
  0x47   : > { %v236_v39 = vmax.f32 %v234_v29, %v235_v35  ;;  %v245_v40 = vmax.f32 %v243_v30, %v244_v36 }
  0x48   : > { %v193_v38 = vadd.f32 %v192_v34, %v191_v28  ;;  %v202_v43 = vadd.f32 %v201_v37, %v200_v33 }
  0x49   : > { %v237_v45 = vrot.slane %v236_v39, 1  ;;  %v246_v46 = vrot.slane %v245_v40, 1 }
  0x4a   : > { %v194_v44 = vrot.slane %v193_v38, 1  ;;  %v203_v47 = vrot.slane %v202_v43, 1 }
  0x4b   : > { %v238_v49 = vmax.f32 %v236_v39, %v237_v45  ;;  %v247_v50 = vmax.f32 %v245_v40, %v246_v46 }
  0x4c   : > { %v195_v48 = vadd.f32 %v194_v44, %v193_v38  ;;  %v204_v52 = vadd.f32 %v203_v47, %v202_v43 }
  0x4d   : > { %v250_v53 = vcombine.low %v238_v49, %v247_v50 }
  0x4e   : > { %v207_v54 = vcombine.low %v195_v48, %v204_v52 }
  0x4f   : > { %v257_v55 = vrot.slane %v250_v53, %v213_v51 }
  0x50   : > { %v214_v56 = vrot.slane %v207_v54, %v213_v51 }
  0x51   : > { %v264_v59 = vrot.slane %v257_v55, %v213_v51 }
  0x52   : > { %v221_v60 = vrot.slane %v214_v56, %v213_v51 }
  0x53   : > { %v266_v61 = vmax.f32 %v229_v57, %v264_v59 }
  0x54   : > { %v223_v62 = vadd.f32 %v221_v60, %v186_v58 }
  0x55   : > { %267 = vst.msk [vmem:[#allocation3] sm:$0x3] %vm719_vm0, %v266_v61 }
  0x56   : > { %228 = vst.msk [vmem:[#allocation2] sm:$0x3] %vm719_vm0, %v223_v62 }
  0x5c   : > { %v274_v63 = vld [vmem:[#allocation3] sm:$0x3] }
  0x5d   : > { %v271_v0 = vld [vmem:[#allocation2] sm:$0x3]  ;;  %393 = vst.msk [vmem:[%s164_s27 + $0x1] ss:$2 sm:$0x3] %vm719_vm0, %v274_v63 }
  0x5e   : > { %v272_v2 = vmul.f32 0.03125, %v271_v0 }
  0x60   : > { %273 = vst.msk [vmem:[%s164_s27] ss:$2 sm:$0x3] %vm719_vm0, %v272_v2 }
  0x61   : > { %511 = shalt.err (!%p508_p5)
}
  0x62   : > { %s512_s22 = scalar_lea.hbm %s740_s12, 64  ;;  %s516_s25 = scalar_lea.hbm %s790_s1, 128 }
  0x63   : > { %p513_p4 = scmp.ne.s32.totalorder %s740_s12, %s512_s22  ;;  %p517_p12 = scmp.lt.u32.totalorder %s740_s12, %s790_s1 }
  0x64   : > { %p518_p1 = scmp.lt.u32.totalorder %s516_s25, %s512_s22  ;;  %p520_p8 = scmp.lt.u32.totalorder %s512_s22, %s740_s12 }
  0x65   : > { %p514_p7 = pnand %p513_p4, %p800_p9 }
  0x66   : > { %p519_p3 = por %p518_p1, %p517_p12 }
  0x67   : > { %p515_p10 = pneg %p514_p7 }
  0x68   : > { %p521_p11 = por %p520_p8, %p519_p3 }
  0x6a   : > { %p522_p0 = pnand %p521_p11, %p515_p10 }
  0x6c   : > { %525 = shalt.err (!%p522_p0)
}
  0x6d   : > { %403 = dma.vmem_to_hbm [thread:$0]  (%p800_p9), %s735_s29, 64, %s740_s12, %s278_s9  }
  0x6e PF: > { %s306_s3 = sand.u32 1, %s560_s6   ;;  %p801_p6 = scmp.ne.s32.totalorder %s795_s21, 0 }
  0x6f   : > { %p802_p13 = scmp.ge.s32.totalorder %s580_s11, 2  ;;  %s307_s4 = scalar_lea.sflag [#allocation6], %s306_s3 }
  0x71   : > { %p410_p2 = pnand %p802_p13, %p801_p6 }
  0x73   : > { %555 = dma.done.wait (!%p410_p2), %s307_s4, 64  }
  0x74   : > { %557 = vsyncadd (!%p410_p2), %s307_s4, 4294967232  ;;  %s17_s11 = sadd.s32 1, %s580_s11   ;;  %s803_s6 = smov %s564_s7 }
  0x75   : > { %p14_p5 = scmp.ge.s32.totalorder %s17_s11, 4   ;;  %s804_s7 = smov %s568_s8 }
  0x76   : > { %s805_s8 = smov %s655_s20  ;;  %s806_s9 = smov %s576_s10 }
  0x77   : > { %s807_s10 = smov %s809_s14  ;;  %16 = sbr.rel (!%p14_p5) target bundleno = 6 (0x6), region = 78 }
  0x7e   :  { %312 = vsyncpa [#allocation5], 1 }
  0x7f   :  { %314 = vsyncpa [#allocation5 + $0x1], 1 }
  0x80   :  { %315 = vsyncpa [#allocation6], 1 }
  0x81   :  { %317 = vsyncpa [#allocation6 + $0x1], 1 }

</bundles_post_ra>
